<compile_context>
chip_gen: v7x
topology: tpu7x:2x2x1
jax: 0.10.0
libtpu: 0.0.40
codegen_flags: <defaults>
</compile_context>

<pallas_src>
import functools
import math

import jax
import jax.numpy as jnp
from jax.experimental import pallas as pl
from jax.experimental.pallas import tpu as pltpu

_EPS = 1e-5
_TARGET_TILE_BYTES = 4 * 1024 * 1024     # ~4 MiB of input per tile (HBM-bound)
_MIN_GRID_STEPS = 8                      # keep both v7x TCs + pipeline busy
_MAX_FOLD_LANES = 512                    # cap folded lane width in the 3-D path


def _round_up(x, m):
    return ((x + m - 1) // m) * m


def _cdiv(a, b):
    return -(-a // b)


def _sublane_quantum(dtype):
    """Sublane tiling quantum: 8 for f32, 16 for bf16/f16, 32 for int8/fp8."""
    itemsize = jnp.dtype(dtype).itemsize
    return 8 * max(1, 4 // max(1, itemsize))


def _vmem_capacity_bytes():
    try:
        return int(pltpu.get_tpu_info().vmem_capacity_bytes)
    except Exception:  # be robust if the query is unavailable
        return 64 * 1024 * 1024          # conservative: v7x physical VMEM


def _vmem_limit_bytes(tile_in_bytes, tile_out_bytes, resident_bytes):
    """Scoped-VMEM limit: double-buffered in+out plus residents plus slack."""
    cap = _vmem_capacity_bytes()
    need = 2 * (tile_in_bytes + tile_out_bytes) + resident_bytes + (4 << 20)
    limit = min(max(need, 32 << 20), (cap * 3) // 4)
    return int(max(limit, need))


def _pick_tile(extent, quantum, budget_bytes, bytes_per_unit, min_steps):
    """Tile length along one axis.

    Returns the full `extent` if extent <= quantum (always a legal block dim),
    otherwise a multiple of `quantum` bounded by the VMEM byte budget and
    shrunk (best effort) so the axis yields at least `min_steps` grid steps.
    Non-dividing tiles are fine: the grid uses cdiv and the remainder block is
    padded on read / masked on write.
    """
    if extent <= quantum:
        return extent
    cap = max(1, budget_bytes // max(1, bytes_per_unit))
    if min_steps > 1:
        cap = min(cap, _cdiv(extent, min_steps))
    tile = min(extent, cap)
    return max(quantum, (tile // quantum) * quantum)


# ---------------------------------------------------------------------------
# 4-D path: blocks are (1, C, S); reduce over channels (sublanes), lanes = H*W
# ---------------------------------------------------------------------------
def _ln_nchw_withbias_kernel(x_ref, w_ref, b_ref, o_ref):
    x = x_ref[0].astype(jnp.float32)                        # (C, S)
    inv_c = 1.0 / x.shape[0]
    mu = jnp.sum(x, axis=0, keepdims=True) * inv_c          # (1, S)
    xc = x - mu
    var = jnp.sum(xc * xc, axis=0, keepdims=True) * inv_c   # two-pass (centered)
    inv = jax.lax.rsqrt(var + _EPS)
    w = w_ref[0].astype(jnp.float32)                        # (C, 1)
    b = b_ref[0].astype(jnp.float32)
    o_ref[0] = (xc * inv * w + b).astype(o_ref.dtype)


def _ln_nchw_biasfree_kernel(x_ref, w_ref, o_ref):
    # BiasFree: variance uses the mean, but x itself is NOT mean-subtracted.
    x = x_ref[0].astype(jnp.float32)
    inv_c = 1.0 / x.shape[0]
    mu = jnp.sum(x, axis=0, keepdims=True) * inv_c
    xc = x - mu
    var = jnp.sum(xc * xc, axis=0, keepdims=True) * inv_c
    inv = jax.lax.rsqrt(var + _EPS)
    w = w_ref[0].astype(jnp.float32)
    o_ref[0] = (x * inv * w).astype(o_ref.dtype)


def _run_ln_nchw(x3, weight, bias, ln_type):
    # x3: (B, C, HW) — no transpose was needed to build this view.
    B, C, HW = x3.shape
    itemsize = jnp.dtype(x3.dtype).itemsize
    c_pad = _round_up(C, _sublane_quantum(x3.dtype))        # sublane padding of C
    tile_s = _pick_tile(HW, 128, _TARGET_TILE_BYTES, c_pad * itemsize,
                        _cdiv(_MIN_GRID_STEPS, B))
    grid = (B, _cdiv(HW, tile_s))

    tile_bytes = c_pad * tile_s * itemsize
    cparams = pltpu.CompilerParams(
        dimension_semantics=("parallel", "parallel"),
        vmem_limit_bytes=_vmem_limit_bytes(tile_bytes, tile_bytes, 1 << 20))

    x_spec = pl.BlockSpec((1, C, tile_s), lambda b, s: (b, 0, s))
    p_spec = pl.BlockSpec((1, C, 1), lambda b, s: (0, 0, 0))
    out_spec = pl.BlockSpec((1, C, tile_s), lambda b, s: (b, 0, s))
    out_shape = jax.ShapeDtypeStruct((B, C, HW), x3.dtype)

    w3 = weight.reshape(1, C, 1)
    if ln_type == "BiasFree":
        return pl.pallas_call(
            _ln_nchw_biasfree_kernel,
            out_shape=out_shape,
            grid_spec=pl.GridSpec(grid=grid, in_specs=[x_spec, p_spec],
                                  out_specs=out_spec),
            compiler_params=cparams,
        )(x3, w3)
    b3 = bias.reshape(1, C, 1)
    return pl.pallas_call(
        _ln_nchw_withbias_kernel,
        out_shape=out_shape,
        grid_spec=pl.GridSpec(grid=grid, in_specs=[x_spec, p_spec, p_spec],
                              out_specs=out_spec),
        compiler_params=cparams,
    )(x3, w3, b3)


# ---------------------------------------------------------------------------
# 3-D path: (b, n, c) flattened to (tokens, C).
#   * C < 128 : fold k tokens per row (free reshape) -> lane-dense (T/k, k*C);
#               segmented reduce via MXU matmul with a block-ones matrix.
#   * else    : plain (tile_r, C) row kernel (C already lane-dense enough).
# ---------------------------------------------------------------------------
def _ln_fold_withbias_kernel(x_ref, m_ref, w_ref, b_ref, o_ref, *, inv_c):
    x = x_ref[...].astype(jnp.float32)                      # (T, k*C), lane-dense
    M = m_ref[...]                                          # (k*C, k*C) block-ones
    mu = jnp.dot(x, M, preferred_element_type=jnp.float32,
                 precision=jax.lax.Precision.HIGHEST) * inv_c
    xc = x - mu
    var = jnp.dot(xc * xc, M, preferred_element_type=jnp.float32,
                  precision=jax.lax.Precision.HIGHEST) * inv_c
    inv = jax.lax.rsqrt(var + _EPS)
    o_ref[...] = (xc * inv * w_ref[...].astype(jnp.float32)
                  + b_ref[...].astype(jnp.float32)).astype(o_ref.dtype)


def _ln_fold_biasfree_kernel(x_ref, m_ref, w_ref, o_ref, *, inv_c):
    x = x_ref[...].astype(jnp.float32)
    M = m_ref[...]
    mu = jnp.dot(x, M, preferred_element_type=jnp.float32,
                 precision=jax.lax.Precision.HIGHEST) * inv_c
    xc = x - mu
    var = jnp.dot(xc * xc, M, preferred_element_type=jnp.float32,
                  precision=jax.lax.Precision.HIGHEST) * inv_c
    inv = jax.lax.rsqrt(var + _EPS)
    o_ref[...] = (x * inv * w_ref[...].astype(jnp.float32)).astype(o_ref.dtype)


def _ln_rows_withbias_kernel(x_ref, w_ref, b_ref, o_ref):
    x = x_ref[...].astype(jnp.float32)                      # (T, C)
    inv_c = 1.0 / x.shape[-1]
    mu = jnp.sum(x, axis=-1, keepdims=True) * inv_c
    xc = x - mu
    var = jnp.sum(xc * xc, axis=-1, keepdims=True) * inv_c
    inv = jax.lax.rsqrt(var + _EPS)
    o_ref[...] = (xc * inv * w_ref[...].astype(jnp.float32)
                  + b_ref[...].astype(jnp.float32)).astype(o_ref.dtype)


def _ln_rows_biasfree_kernel(x_ref, w_ref, o_ref):
    x = x_ref[...].astype(jnp.float32)
    inv_c = 1.0 / x.shape[-1]
    mu = jnp.sum(x, axis=-1, keepdims=True) * inv_c
    xc = x - mu
    var = jnp.sum(xc * xc, axis=-1, keepdims=True) * inv_c
    inv = jax.lax.rsqrt(var + _EPS)
    o_ref[...] = (x * inv * w_ref[...].astype(jnp.float32)).astype(o_ref.dtype)


def _run_ln_rows(tokens, weight, bias, ln_type):
    T, C = tokens.shape
    itemsize = jnp.dtype(tokens.dtype).itemsize
    quantum = _sublane_quantum(tokens.dtype)

    L = (C * 128) // math.gcd(C, 128)                       # lcm(C, 128)
    k = L // C
    fold = (C < 128) and (L <= _MAX_FOLD_LANES) and (T % k == 0)

    if fold:
        rows = T // k
        xf = tokens.reshape(rows, L)                        # free row-major reshape
        tile_r = _pick_tile(rows, quantum, _TARGET_TILE_BYTES, L * itemsize,
                            _MIN_GRID_STEPS)
        grid = (_cdiv(rows, tile_r),)

        seg = jnp.arange(L, dtype=jnp.int32) // C
        M = (seg[:, None] == seg[None, :]).astype(jnp.float32)  # block-diag ones
        wk = jnp.tile(weight, k).reshape(1, L)

        tile_bytes = _round_up(tile_r, quantum) * L * itemsize
        cparams = pltpu.CompilerParams(
            dimension_semantics=("parallel",),
            vmem_limit_bytes=_vmem_limit_bytes(tile_bytes, tile_bytes,
                                               L * L * 4 + (1 << 20)))

        x_spec = pl.BlockSpec((tile_r, L), lambda i: (i, 0))
        m_spec = pl.BlockSpec((L, L), lambda i: (0, 0))
        p_spec = pl.BlockSpec((1, L), lambda i: (0, 0))
        out_spec = pl.BlockSpec((tile_r, L), lambda i: (i, 0))
        out_shape = jax.ShapeDtypeStruct((rows, L), tokens.dtype)

        if ln_type == "BiasFree":
            out = pl.pallas_call(
                functools.partial(_ln_fold_biasfree_kernel, inv_c=1.0 / C),
                out_shape=out_shape,
                grid_spec=pl.GridSpec(grid=grid, in_specs=[x_spec, m_spec, p_spec],
                                      out_specs=out_spec),
                compiler_params=cparams,
            )(xf, M, wk)
        else:
            bk = jnp.tile(bias, k).reshape(1, L)
            out = pl.pallas_call(
                functools.partial(_ln_fold_withbias_kernel, inv_c=1.0 / C),
                out_shape=out_shape,
                grid_spec=pl.GridSpec(grid=grid,
                                      in_specs=[x_spec, m_spec, p_spec, p_spec],
                                      out_specs=out_spec),
                compiler_params=cparams,
            )(xf, M, wk, bk)
        return out.reshape(T, C)

    # Fallback: C >= 128 (already lane-dense enough) or awkward fold shapes.
    tile_r = _pick_tile(T, quantum, _TARGET_TILE_BYTES,
                        _round_up(C, 128) * itemsize, _MIN_GRID_STEPS)
    grid = (_cdiv(T, tile_r),)
    tile_bytes = _round_up(tile_r, quantum) * _round_up(C, 128) * itemsize
    cparams = pltpu.CompilerParams(
        dimension_semantics=("parallel",),
        vmem_limit_bytes=_vmem_limit_bytes(tile_bytes, tile_bytes, 1 << 20))

    x_spec = pl.BlockSpec((tile_r, C), lambda i: (i, 0))
    p_spec = pl.BlockSpec((1, C), lambda i: (0, 0))
    out_spec = pl.BlockSpec((tile_r, C), lambda i: (i, 0))
    out_shape = jax.ShapeDtypeStruct((T, C), tokens.dtype)

    if ln_type == "BiasFree":
        return pl.pallas_call(
            _ln_rows_biasfree_kernel,
            out_shape=out_shape,
            grid_spec=pl.GridSpec(grid=grid, in_specs=[x_spec, p_spec],
                                  out_specs=out_spec),
            compiler_params=cparams,
        )(tokens, weight.reshape(1, C))
    return pl.pallas_call(
        _ln_rows_withbias_kernel,
        out_shape=out_shape,
        grid_spec=pl.GridSpec(grid=grid, in_specs=[x_spec, p_spec, p_spec],
                              out_specs=out_spec),
        compiler_params=cparams,
    )(tokens, weight.reshape(1, C), bias.reshape(1, C))


@functools.partial(jax.jit, static_argnames=("ln_type",))
def layernorm(x, weight, bias, ln_type="WithBias"):
    """Matches LayerNorm(dim, LayerNorm_type).forward for 4-D NCHW / 3-D input."""
    if x.ndim == 4:
        b, c, h, w = x.shape
        out = _run_ln_nchw(x.reshape(b, c, h * w), weight, bias, ln_type)
        return out.reshape(b, c, h, w)
    b, n, c = x.shape
    out = _run_ln_rows(x.reshape(b * n, c), weight, bias, ln_type)
    return out.reshape(b, n, c)


# ---------------------------------------------------------------------------
# pure-JAX references of the PyTorch semantics
# ---------------------------------------------------------------------------
def _reference_4d(x, weight, bias, ln_type):
    b, c, h, w = x.shape
    t = jnp.transpose(x, (0, 2, 3, 1)).reshape(b, h * w, c).astype(jnp.float32)
    mu = jnp.mean(t, axis=-1, keepdims=True)
    var = jnp.mean((t - mu) ** 2, axis=-1, keepdims=True)
    if ln_type == "BiasFree":
        y = t / jnp.sqrt(var + _EPS) * weight
    else:
        y = (t - mu) / jnp.sqrt(var + _EPS) * weight + bias
    return jnp.transpose(y.reshape(b, h, w, c), (0, 3, 1, 2)).astype(x.dtype)


def _reference_3d(x, weight, bias, ln_type):
    t = x.astype(jnp.float32)
    mu = jnp.mean(t, axis=-1, keepdims=True)
    var = jnp.mean((t - mu) ** 2, axis=-1, keepdims=True)
    if ln_type == "BiasFree":
        y = t / jnp.sqrt(var + _EPS) * weight
    else:
        y = (t - mu) / jnp.sqrt(var + _EPS) * weight + bias
    return y.astype(x.dtype)


if __name__ == "__main__":
    key = jax.random.PRNGKey(0)
    kx, kw, kb, k3, kr, k5 = jax.random.split(key, 6)
    ok = True

    # 4-D NCHW path (main module usage)
    B, C, H, W = 2, 4, 16, 16
    x = jax.random.normal(kx, (B, C, H, W), dtype=jnp.float32)
    weight = jnp.ones((C,), jnp.float32) + 0.1 * jax.random.normal(kw, (C,), jnp.float32)
    bias = jnp.zeros((C,), jnp.float32) + 0.1 * jax.random.normal(kb, (C,), jnp.float32)
    for ln_type in ("WithBias", "BiasFree"):
        out = jax.block_until_ready(layernorm(x, weight, bias, ln_type=ln_type))
        ref = _reference_4d(x, weight, bias, ln_type)
        if not jnp.allclose(out, ref, atol=1e-5, rtol=1e-5):
            ok = False
            print(f"MISMATCH 4D {ln_type}: max abs err "
                  f"{float(jnp.max(jnp.abs(out - ref)))}")

    # 4-D with H*W not a multiple of 128 -> exercises the padded remainder tile
    xr = jax.random.normal(kr, (1, 8, 10, 14), dtype=jnp.float32)
    wr = jnp.ones((8,), jnp.float32) * 0.9
    br = jnp.full((8,), -0.02, jnp.float32)
    for ln_type in ("WithBias", "BiasFree"):
        out = jax.block_until_ready(layernorm(xr, wr, br, ln_type=ln_type))
        ref = _reference_4d(xr, wr, br, ln_type)
        if not jnp.allclose(out, ref, atol=1e-5, rtol=1e-5):
            ok = False
            print(f"MISMATCH 4D-ragged {ln_type}: max abs err "
                  f"{float(jnp.max(jnp.abs(out - ref)))}")

    # 3-D (b, n, c) path, C < 128 -> lane-folded kernel
    Bn, N, Cn = 2, 8, 32
    x3 = jax.random.normal(k3, (Bn, N, Cn), dtype=jnp.float32)
    w3 = jnp.ones((Cn,), jnp.float32) * 1.05
    b3 = jnp.full((Cn,), 0.03, jnp.float32)
    for ln_type in ("WithBias", "BiasFree"):
        out = jax.block_until_ready(layernorm(x3, w3, b3, ln_type=ln_type))
        ref = _reference_3d(x3, w3, b3, ln_type)
        if not jnp.allclose(out, ref, atol=1e-5, rtol=1e-5):
            ok = False
            print(f"MISMATCH 3D {ln_type}: max abs err "
                  f"{float(jnp.max(jnp.abs(out - ref)))}")

    # 3-D path, C >= 128 (non-multiple of 128) -> row-kernel fallback
    Bw, Nw, Cw = 1, 16, 200
    x5 = jax.random.normal(k5, (Bw, Nw, Cw), dtype=jnp.float32)
    w5 = jnp.ones((Cw,), jnp.float32) * 0.98
    b5 = jnp.full((Cw,), 0.01, jnp.float32)
    for ln_type in ("WithBias", "BiasFree"):
        out = jax.block_until_ready(layernorm(x5, w5, b5, ln_type=ln_type))
        ref = _reference_3d(x5, w5, b5, ln_type)
        if not jnp.allclose(out, ref, atol=1e-5, rtol=1e-5):
            ok = False
            print(f"MISMATCH 3D-wide {ln_type}: max abs err "
                  f"{float(jnp.max(jnp.abs(out - ref)))}")

    if ok:
        print("KERNEL_OK")
</pallas_src>

<mosaic_0001>
module attributes {stable_mosaic.version = 11 : i64} {
  func.func @_ln_nchw_withbias_kernel(%arg0: i32, %arg1: i32, %arg2: memref<1x4x128xf32, #tpu.memory_space<vmem>>, %arg3: memref<1x4x1xf32, #tpu.memory_space<vmem>>, %arg4: memref<1x4x1xf32, #tpu.memory_space<vmem>>, %arg5: memref<1x4x128xf32, #tpu.memory_space<vmem>>) attributes {dimension_semantics = [#tpu.dimension_semantics<parallel>, #tpu.dimension_semantics<parallel>], iteration_bounds = array<i64: 2, 2>, scalar_prefetch = 0 : i64, scratch_operands = 0 : i64, tpu.core_type = #tpu.core_type<tc>, window_params = [{transform_indices = @transform_0, window_bounds = array<i64: 1, 4, 128>}, {pipeline_mode = #tpu.pipeline_mode<synchronous>, transform_indices = @transform_1, window_bounds = array<i64: 1, 4, 1>}, {pipeline_mode = #tpu.pipeline_mode<synchronous>, transform_indices = @transform_2, window_bounds = array<i64: 1, 4, 1>}, {transform_indices = @transform_3, window_bounds = array<i64: 1, 4, 128>}]} {
    %c0 = arith.constant 0 : index
    %c0_0 = arith.constant 0 : index
    %c0_1 = arith.constant 0 : index
    %0 = vector.load %arg2[%c0, %c0_0, %c0_1] : memref<1x4x128xf32, #tpu.memory_space<vmem>>, vector<1x4x128xf32>
    %1 = vector.shape_cast %0 : vector<1x4x128xf32> to vector<4x128xf32>
    %cst = arith.constant dense<0.000000e+00> : vector<128xf32>
    %2 = vector.multi_reduction <add>, %1, %cst [0] : vector<4x128xf32> to vector<128xf32>
    %3 = vector.shape_cast %2 : vector<128xf32> to vector<1x128xf32>
    %cst_2 = arith.constant 2.500000e-01 : f32
    %4 = vector.broadcast %cst_2 : f32 to vector<1x128xf32>
    %5 = arith.mulf %3, %4 : vector<1x128xf32>
    %6 = vector.broadcast %5 : vector<1x128xf32> to vector<4x128xf32>
    %7 = arith.subf %1, %6 : vector<4x128xf32>
    %8 = arith.mulf %7, %7 : vector<4x128xf32>
    %cst_3 = arith.constant dense<0.000000e+00> : vector<128xf32>
    %9 = vector.multi_reduction <add>, %8, %cst_3 [0] : vector<4x128xf32> to vector<128xf32>
    %10 = vector.shape_cast %9 : vector<128xf32> to vector<1x128xf32>
    %cst_4 = arith.constant 2.500000e-01 : f32
    %11 = vector.broadcast %cst_4 : f32 to vector<1x128xf32>
    %12 = arith.mulf %10, %11 : vector<1x128xf32>
    %cst_5 = arith.constant 9.99999974E-6 : f32
    %13 = vector.broadcast %cst_5 : f32 to vector<1x128xf32>
    %14 = arith.addf %12, %13 : vector<1x128xf32>
    %15 = math.rsqrt %14 : vector<1x128xf32>
    %c0_6 = arith.constant 0 : index
    %c0_7 = arith.constant 0 : index
    %c0_8 = arith.constant 0 : index
    %16 = vector.load %arg3[%c0_6, %c0_7, %c0_8] : memref<1x4x1xf32, #tpu.memory_space<vmem>>, vector<1x4x1xf32>
    %17 = vector.shape_cast %16 : vector<1x4x1xf32> to vector<4x1xf32>
    %c0_9 = arith.constant 0 : index
    %c0_10 = arith.constant 0 : index
    %c0_11 = arith.constant 0 : index
    %18 = vector.load %arg4[%c0_9, %c0_10, %c0_11] : memref<1x4x1xf32, #tpu.memory_space<vmem>>, vector<1x4x1xf32>
    %19 = vector.shape_cast %18 : vector<1x4x1xf32> to vector<4x1xf32>
    %20 = vector.broadcast %15 : vector<1x128xf32> to vector<4x128xf32>
    %21 = arith.mulf %7, %20 : vector<4x128xf32>
    %22 = vector.broadcast %17 : vector<4x1xf32> to vector<4x128xf32>
    %23 = arith.mulf %21, %22 : vector<4x128xf32>
    %24 = vector.broadcast %19 : vector<4x1xf32> to vector<4x128xf32>
    %25 = arith.addf %23, %24 : vector<4x128xf32>
    %c0_12 = arith.constant 0 : index
    %c0_13 = arith.constant 0 : index
    %c0_14 = arith.constant 0 : index
    %26 = vector.load %arg5[%c0_12, %c0_13, %c0_14] : memref<1x4x128xf32, #tpu.memory_space<vmem>>, vector<1x4x128xf32>
    %27 = vector.shape_cast %26 : vector<1x4x128xf32> to vector<4x128xf32>
    %28 = vector.shape_cast %25 : vector<4x128xf32> to vector<1x4x128xf32>
    tpu.vector_store %arg5[%c0_12, %c0_13, %c0_14], %28 {strides = array<i32>} : memref<1x4x128xf32, #tpu.memory_space<vmem>>, vector<1x4x128xf32>,
    return
  }
  func.func @transform_0(%arg0: i32, %arg1: i32) -> (i32, i32, i32) {
    %c0_i32 = arith.constant 0 : i32
    %c0_i32_0 = arith.constant 0 : i32
    return %arg0, %c0_i32, %arg1 : i32, i32, i32
  }
  func.func @transform_1(%arg0: i32, %arg1: i32) -> (i32, i32, i32) {
    %c0_i32 = arith.constant 0 : i32
    %c0_i32_0 = arith.constant 0 : i32
    %c0_i32_1 = arith.constant 0 : i32
    %c0_i32_2 = arith.constant 0 : i32
    return %c0_i32, %c0_i32_0, %c0_i32_1 : i32, i32, i32
  }
  func.func @transform_2(%arg0: i32, %arg1: i32) -> (i32, i32, i32) {
    %c0_i32 = arith.constant 0 : i32
    %c0_i32_0 = arith.constant 0 : i32
    %c0_i32_1 = arith.constant 0 : i32
    %c0_i32_2 = arith.constant 0 : i32
    return %c0_i32, %c0_i32_0, %c0_i32_1 : i32, i32, i32
  }
  func.func @transform_3(%arg0: i32, %arg1: i32) -> (i32, i32, i32) {
    %c0_i32 = arith.constant 0 : i32
    %c0_i32_0 = arith.constant 0 : i32
    return %arg0, %c0_i32, %arg1 : i32, i32, i32
  }
}

</mosaic_0001>

<bundles_post_ra>
// kernel: layernorm.1
= control target key start
LH: loop header
LB: loop body
LE: loop exit
PB: predicated region body
PF: predicated region fallthrough
CT: control target
= control target key end

     0   :  { %s442_s12 = smov 0   ;;  %s444_s13 = smov 0   ;;  %s506_s0 = inlined_call_operand.vmem [shape: f32[2,4,256], index: 0, kind: input, shape index: {}]   ;;  %s507_s1 = inlined_call_operand.vmem [shape: f32[1,4,1], index: 1, kind: input, shape index: {}]   ;;  %s508_s2 = inlined_call_operand.vmem [shape: f32[1,4,1], index: 2, kind: input, shape index: {}]   ;;  %s509_s3 = inlined_call_operand.vmem [shape: f32[2,4,256], index: 3, kind: output, shape index: {}]  }
   0x1   :  { %s446_s14 = smov 0   ;;  %s448_s15 = smov 0  }
   0x2   :  { %s450_s16 = smov 0  }
   0x3 LB: > { %s22_s17 = sadd.s32 1, %s411_s14  ;;  %s25_s18 = sadd.s32 1, %s415_s15  ;;  %s419_s16 = sphi %s450_s16, %s13_s16   ;;  %s415_s15 = sphi %s448_s15, %s513_s15   ;;  %s411_s14 = sphi %s446_s14, %s512_s14   ;;  %s407_s13 = sphi %s444_s13, %s511_s13   ;;  %s403_s12 = sphi %s442_s12, %s510_s12  }
   0x4   : > { %p23_p0 = scmp.ge.s32.totalorder %s22_s17, 2  ;;  %p330_p1 = scmp.ge.s32.totalorder %s419_s16, 1 }
   0x5   : > { %p156_p2 = scmp.lt.s32.totalorder %s419_s16, 5 }
   0x6   : > { %s515_s17 = smov (%p23_p0, %s22_s17), 0  ;;  %s517_s18 = smov (!%p23_p0, %s25_s18), %s415_s15 }
   0x7   : > { %p157_p3 = pnand %p330_p1, %p156_p2  ;;  %p27_p4 = scmp.ge.s32.totalorder %s517_s18, 2 }
   0x8   : > { %v224_v0 = vld [vmem:[%s507_s1] sm:$0xf] (!%p157_p3)  ;;  %v421_v1 = vmov (!%p157_p3), 0   ;;  %p186_p5 = scmp.lt.s32.totalorder (!%p157_p3), %s407_s13, 1  ;;  %p188_p6 = scmp.lt.s32.totalorder (!%p157_p3), %s403_s12, 1  ;;  %vm203_vm0 = vcmask (!%p157_p3), 1043456  }
   0x9   : > { %s519_s18 = smov (%p27_p4, %s517_s18), 0  ;;  %160 = sbr.rel (%p157_p3) target bundleno = 146 (0x92), region = 32 }
   0xa   : > { %378 = vset.pattern.permute.xlu0 (!%p157_p3), %v421_v1  ;;  %v225_v2 = vld [vmem:[%s508_s2] sm:$0xf] (!%p157_p3) }
   0xb   : > { %229 = vperm.xlu0 (!%p157_p3), %378, %v224_v0  }
   0xf   : > { %235 = vperm.xlu0 (!%p157_p3), %378, %v225_v2  }
  0x10   : > { %s521_s13 = smov (!%p186_p5, %s407_s13), 1  ;;  %s523_s12 = smov (!%p188_p6, %s403_s12), 1 }
  0x11   : > { %s331_s23 = sshll.u32 %s521_s13, 1 }
  0x12   : > { %s478_s24 = sadd.s32 %s331_s23, %s523_s12 }
  0x13   : > { %s332_s25 = sshll.u32 %s478_s24, 2 }
  0x14   : > { %s193_s28 = scalar_lea.vmem %s506_s0, %s332_s25  ;;  %s201_s4 = scalar_lea.vmem %s509_s3, %s332_s25 }
  0x15   : > { %v202_v3 = vld [vmem:[%s193_s28] sm:$0xf] }
  0x16   : > { %v204_v4 = vsel %vm203_vm0, %v202_v3, 0.0 }
  0x17   : > { %v205_v5 = vrot.slane %v204_v4, 4 }
  0x19   : > { %v206_v6 = vadd.f32 %v205_v5, %v204_v4 }
  0x1b   : > { %v207_v7 = vrot.slane %v206_v6, 2 }
  0x1d   : > { %v208_v8 = vadd.f32 %v207_v7, %v206_v6 }
  0x1f   : > { %v209_v9 = vrot.slane %v208_v8, 1 }
  0x21   : > { %v210_v10 = vadd.f32 %v209_v9, %v208_v8 }
  0x23   : > { %v211_v11 = vmul.f32 0.25, %v210_v10 }
  0x25   : > { %v212_v12 = vsub.f32 %v202_v3, %v211_v11 }
  0x27   : > { %v213_v13 = vmul.f32 %v212_v12, %v212_v12 }
  0x29   : > { %v214_v14 = vsel %vm203_vm0, %v213_v13, 0.0 }
  0x2a   : > { %v215_v15 = vrot.slane %v214_v14, 4 }
  0x2c   : > { %v216_v16 = vadd.f32 %v215_v15, %v214_v14 }
  0x2e   : > { %v217_v17 = vrot.slane %v216_v16, 2 }
  0x30   : > { %v218_v18 = vadd.f32 %v217_v17, %v216_v16 }
  0x32   : > { %v219_v19 = vrot.slane %v218_v18, 1 }
  0x34   : > { %v220_v20 = vadd.f32 %v219_v19, %v218_v18 }
  0x36   : > { %v221_v21 = vmul.f32 0.25, %v220_v20 }
  0x38   : > { %v222_v22 = vadd.f32 1e-05, %v221_v21 }
  0x3a   : > { %379 = vrsqrt.f32 %v222_v22 }
  0x44   : > { %v380_v23 = vpop.eup %379 }
  0x45   : > { %v226_v24 = vmul.f32 %v380_v23, %v212_v12 }
  0x8a   : > { %v230_v25 = vpop.permute.xlu0 %229 }
  0x8b   : > { %v232_v26 = vmul.f32 %v230_v25, %v226_v24 }
  0x8e   : > { %v236_v27 = vpop.permute.xlu0 %235 }
  0x8f   : > { %v238_v28 = vadd.f32 %v236_v27, %v232_v26 }
  0x91   : > { %239 = vst [vmem:[%s201_s4] sm:$0xf] %v238_v28 }
  0x92 PF: > { %s13_s16 = sadd.s32 1, %s419_s16   ;;  %s510_s12 = smov %s411_s14 }
  0x93   : > { %p10_p7 = scmp.ge.s32.totalorder %s13_s16, 6   ;;  %s511_s13 = smov %s415_s15 }
  0x94   : > { %s512_s14 = smov %s515_s17  ;;  %s513_s15 = smov %s519_s18 }
  0x95   :  { %12 = sbr.rel (!%p10_p7) target bundleno = 3 (0x3), region = 62 }

</bundles_post_ra>
